<compile_context>
chip_gen: v7x
topology: tpu7x:2x2x1
jax: 0.10.0
libtpu: 0.0.40
codegen_flags: <defaults>
</compile_context>

<pallas_src>
import functools

import jax
import jax.numpy as jnp
import numpy as np
from jax import lax
from jax.experimental import pallas as pl
from jax.experimental.pallas import tpu as pltpu


# ---------------------------------------------------------------------------
# Kernel bodies (channel-major: features are [C, pixels])
# ---------------------------------------------------------------------------
def _attention_core(src_ref, ref_ref, qk_ref, mask_ref):
    """Returns (flow, src_att), each [C, TQ] float32, for the current query tile."""
    src = src_ref[0]                    # [C, P]   bf16  (resident per batch)
    ref = ref_ref[0]                    # [C, P]   bf16  (resident per batch)
    qk = qk_ref[0]                      # [C4, P]  bf16  (hoisted 1x1-conv queries)
    m = mask_ref[0]                     # [1, TQ]  f32   src_mask pixels of this tile

    C, P = src.shape
    TQ = m.shape[-1]

    if TQ == P:
        # Single query tile per batch element: static full-width views.
        q_tile = qk                                                  # [C4, TQ]
        ref_t = ref.astype(jnp.float32)                              # [C, TQ]
    else:
        # Free 128-aligned column slice of the resident VMEM blocks.
        qoff = pl.multiple_of(pl.program_id(1) * TQ, 128)
        q_tile = qk_ref[0, :, pl.ds(qoff, TQ)]                       # [C4, TQ]
        ref_t = ref_ref[0, :, pl.ds(qoff, TQ)].astype(jnp.float32)   # [C, TQ]

    # scores[i, j] = q_tile[:, i] . qk[:, j]  (bf16 MXU operands, f32 accum)
    scores = lax.dot_general(q_tile, qk, (((0,), (0,)), ((), ())),
                             preferred_element_type=jnp.float32)     # [TQ, P]
    scores = scores - jnp.max(scores, axis=-1, keepdims=True)
    e = jnp.exp(scores).astype(jnp.bfloat16)                         # [TQ, P]

    # Deferred softmax normalization: row-sums via a ones-row GEMM on the
    # (nearly idle) MXU so the result is already lane-major [1, TQ]; the
    # attention map is applied unnormalized and only the tiny [C, TQ]
    # results get scaled by the approx reciprocal.
    ones_row = jnp.ones((1, P), jnp.bfloat16)
    denom = lax.dot_general(ones_row, e, (((1,), (1,)), ((), ())),
                            preferred_element_type=jnp.float32)      # [1, TQ]
    inv = pl.reciprocal(denom, approx=True)                          # [1, TQ]

    src_att = lax.dot_general(src, e, (((1,), (1,)), ((), ())),
                              preferred_element_type=jnp.float32) * inv   # [C, TQ]
    ref_att = lax.dot_general(ref, e, (((1,), (1,)), ((), ())),
                              preferred_element_type=jnp.float32) * inv   # [C, TQ]

    # ex_guide_flow = (1 - mask) * ref_att + mask * ref_feature   (f32 blend)
    flow = (1.0 - m) * ref_att + m * ref_t
    return flow, src_att


def ega_kernel_no_out(src_ref, ref_ref, qk_ref, mask_ref, out_ref):
    flow, src_att = _attention_core(src_ref, ref_ref, qk_ref, mask_ref)
    C = flow.shape[0]
    # Two direct lane-dense stores (torch.cat([flow, src_att], dim=1) order).
    out_ref[0, :C, :] = flow.astype(out_ref.dtype)
    out_ref[0, C:, :] = src_att.astype(out_ref.dtype)


def ega_kernel_with_out(src_ref, ref_ref, qk_ref, mask_ref,
                        w2a_ref, w2b_ref, b2_ref, out_ref):
    flow, src_att = _attention_core(src_ref, ref_ref, qk_ref, mask_ref)
    # out_conv as split GEMMs (no [2C, TQ] concat copy); K = C is tiny so the
    # f32 operands cost nothing.
    out = (jnp.dot(w2a_ref[...], flow, preferred_element_type=jnp.float32)
           + jnp.dot(w2b_ref[...], src_att, preferred_element_type=jnp.float32)
           + b2_ref[...])                                            # [OC, TQ]
    out_ref[0] = out.astype(out_ref.dtype)


# ---------------------------------------------------------------------------
# Tiling / VMEM helpers
# ---------------------------------------------------------------------------
def _pick_tq(P, tq_request):
    """Query-tile size: multiple of 128 dividing P, bounded so the [TQ, P]
    intermediates stay VMEM-friendly on every TPU generation."""
    if P % 128 != 0:
        # TODO(synk): pad the pixel axis for very large non-128-aligned
        # resolutions instead of falling back to a single [P, P] scores tile.
        return P
    if tq_request is None:
        tq_request = P if P <= 1024 else 256   # small images: one tile per batch
    tq_request = max(128, (int(tq_request) // 128) * 128)
    tq = min(tq_request, P)
    budget_elems = (24 << 20) // 6             # scores f32 + e bf16 ~6 B / element
    while tq > 128 and (P % tq != 0 or tq * P > budget_elems):
        tq -= 128
    # TODO(synk): for P so large that even TQ=128 exceeds the budget, add a
    # key-pixel grid axis with flash-style online softmax.
    return tq


def _vmem_limit_bytes(C, C4, P, TQ, out_c):
    """Rough per-step VMEM footprint (double-buffered blocks + live values)."""
    bf16, f32 = 2, 4
    est = 0
    est += 2 * 2 * C * P * bf16          # src + ref resident blocks
    est += 2 * C4 * P * bf16             # q_keys resident block
    est += 2 * 2 * TQ * f32              # mask tiles
    est += 2 * out_c * TQ * f32          # output tiles
    est += 2 * TQ * P * f32              # scores + exp temporary
    est += TQ * P * bf16                 # e (bf16)
    est += 8 * C * TQ * f32              # per-tile [C, TQ] temporaries
    est += 2 << 20                       # weights, bias, slack
    est = int(1.5 * est)
    # Cap below v7x's 64 MiB physical VMEM (leaves compiler headroom); also a
    # safe scoped request on v5e/v6e (128 MiB physical).
    return int(min(max(est, 32 << 20), 48 << 20))


# ---------------------------------------------------------------------------
# Wrapper (NCHW in / NCHW out)
# ---------------------------------------------------------------------------
@functools.partial(jax.jit, static_argnames=("tq",))
def example_guided_attention(src_mask, src_feature, ref_feature,
                             w_conv, w_out=None, b_out=None, *, tq=None):
    """
    src_mask:    [N, 1, H, W]  float32
    src_feature: [N, C, H, W]  float32
    ref_feature: [N, C, H, W]  float32
    w_conv:      [C//4, C]     (1x1 conv weight, no bias)
    w_out:       [OC, 2C]      optional (1x1 out_conv weight)
    b_out:       [OC]          optional (out_conv bias)
    Returns NCHW: [N, 2C, H, W] or [N, OC, H, W].
    """
    N, C, H, W = src_feature.shape
    P = H * W
    C4 = w_conv.shape[0]

    TQ = _pick_tq(P, tq)
    NQ = P // TQ

    # NCHW -> channel-major [N, C, P]: pure reshapes, no transposes.
    src_r = src_feature.reshape(N, C, P)
    ref_r = ref_feature.reshape(N, C, P)
    mask_r = src_mask.reshape(N, 1, P).astype(jnp.float32)

    src_bf = src_r.astype(jnp.bfloat16)
    ref_bf = ref_r.astype(jnp.bfloat16)
    # 1x1-conv queries hoisted out of the kernel (depend only on n; tiny C4 rows).
    qk_bf = jnp.einsum('oc,ncp->nop', w_conv, src_r).astype(jnp.bfloat16)  # [N,C4,P]

    src_spec = pl.BlockSpec((1, C, P), lambda n, q: (n, 0, 0))    # resident / batch
    ref_spec = pl.BlockSpec((1, C, P), lambda n, q: (n, 0, 0))    # resident / batch
    qk_spec = pl.BlockSpec((1, C4, P), lambda n, q: (n, 0, 0))    # resident / batch
    mask_spec = pl.BlockSpec((1, 1, TQ), lambda n, q: (n, 0, q))

    if w_out is not None:
        OC = w_out.shape[0]
        w2a = w_out[:, :C].astype(jnp.float32)            # multiplies ex_guide_flow
        w2b = w_out[:, C:].astype(jnp.float32)            # multiplies src_att
        b2 = b_out.reshape(OC, 1).astype(jnp.float32)
        out_c = OC
        kernel = ega_kernel_with_out
        extra_inputs = (w2a, w2b, b2)
        extra_specs = [pl.BlockSpec((OC, C), lambda n, q: (0, 0)),
                       pl.BlockSpec((OC, C), lambda n, q: (0, 0)),
                       pl.BlockSpec((OC, 1), lambda n, q: (0, 0))]
    else:
        out_c = 2 * C
        kernel = ega_kernel_no_out
        extra_inputs = ()
        extra_specs = []

    out_cp = pl.pallas_call(
        kernel,
        out_shape=jax.ShapeDtypeStruct((N, out_c, P), jnp.float32),
        grid_spec=pltpu.PrefetchScalarGridSpec(
            num_scalar_prefetch=0,
            grid=(N, NQ),
            in_specs=[src_spec, ref_spec, qk_spec, mask_spec] + extra_specs,
            out_specs=pl.BlockSpec((1, out_c, TQ), lambda n, q: (n, 0, q)),
        ),
        compiler_params=pltpu.CompilerParams(
            dimension_semantics=("parallel", "parallel"),
            vmem_limit_bytes=_vmem_limit_bytes(C, C4, P, TQ, out_c)),
    )(src_bf, ref_bf, qk_bf, mask_r, *extra_inputs)

    # channel-major [N, out_c, P] -> NCHW: pure reshape.
    return out_cp.reshape(N, out_c, H, W)


# ---------------------------------------------------------------------------
# Pure-JAX f32 reference (mirrors the PyTorch forward, NCHW)
# ---------------------------------------------------------------------------
def reference(src_mask, src_feature, ref_feature, w_conv, w_out=None, b_out=None):
    N, C, H, W = src_feature.shape
    P = H * W
    query = jnp.einsum('oc,nchw->nohw', w_conv, src_feature)              # 1x1 conv
    query = query.reshape(N, -1, P)                                        # [N, C4, P]
    att = jax.nn.softmax(jnp.einsum('ncp,ncq->npq', query, query), axis=-1)

    def apply_map(feat):
        pixels = feat.reshape(N, C, P)
        return jnp.einsum('ncp,nqp->ncq', pixels, att).reshape(N, C, H, W)

    src_att = apply_map(src_feature)
    ref_att = apply_map(ref_feature)
    flow = (1.0 - src_mask) * ref_att + src_mask * ref_feature
    out = jnp.concatenate([flow, src_att], axis=1)
    if w_out is not None:
        out = jnp.einsum('oc,nchw->nohw', w_out, out) + b_out[None, :, None, None]
    return out


# ---------------------------------------------------------------------------
if __name__ == "__main__":
    key = jax.random.PRNGKey(0)
    N, C, H, W = 2, 8, 16, 16      # in_channels=8 -> conv produces C//4 = 2 channels
    OC = 4                          # out_channels

    k1, k2, k3, k4, k5, k6 = jax.random.split(key, 6)
    src_feature = jax.random.normal(k1, (N, C, H, W), dtype=jnp.float32)
    ref_feature = jax.random.normal(k2, (N, C, H, W), dtype=jnp.float32)
    src_mask = jax.random.uniform(k3, (N, 1, H, W), dtype=jnp.float32)

    # deterministic synthetic parameters (shapes match nn.Conv2d 1x1 weights)
    w_conv = 0.1 * jax.random.normal(k4, (C // 4, C), dtype=jnp.float32)   # conv: no bias
    w_out = 0.1 * jax.random.normal(k5, (OC, 2 * C), dtype=jnp.float32)    # out_conv weight
    b_out = 0.1 * jax.random.normal(k6, (OC,), dtype=jnp.float32)          # out_conv bias

    ref_full = reference(src_mask, src_feature, ref_feature, w_conv, w_out, b_out)
    ref_noout = reference(src_mask, src_feature, ref_feature, w_conv)

    # 1) default tiling: P=256 collapses to a single query tile (grid=(N, 1))
    out = jax.block_until_ready(
        example_guided_attention(src_mask, src_feature, ref_feature,
                                 w_conv, w_out, b_out))
    np.testing.assert_allclose(np.asarray(out), np.asarray(ref_full),
                               rtol=2e-2, atol=2e-2)

    # 2) explicit tq=128: exercises the multi-tile query grid (grid=(N, 2))
    out_t = jax.block_until_ready(
        example_guided_attention(src_mask, src_feature, ref_feature,
                                 w_conv, w_out, b_out, tq=128))
    np.testing.assert_allclose(np.asarray(out_t), np.asarray(ref_full),
                               rtol=2e-2, atol=2e-2)

    # 3) out_channels=None path (tiled)
    out2 = jax.block_until_ready(
        example_guided_attention(src_mask, src_feature, ref_feature, w_conv, tq=128))
    np.testing.assert_allclose(np.asarray(out2), np.asarray(ref_noout),
                               rtol=2e-2, atol=2e-2)

    print("KERNEL_OK")
</pallas_src>

<mosaic_0001>
module attributes {stable_mosaic.version = 11 : i64} {
  func.func @ega_kernel_with_out(%arg0: i32, %arg1: i32, %arg2: memref<1x8x256xbf16, #tpu.memory_space<vmem>>, %arg3: memref<1x8x256xbf16, #tpu.memory_space<vmem>>, %arg4: memref<1x2x256xbf16, #tpu.memory_space<vmem>>, %arg5: memref<1x1x256xf32, #tpu.memory_space<vmem>>, %arg6: memref<4x8xf32, #tpu.memory_space<vmem>>, %arg7: memref<4x8xf32, #tpu.memory_space<vmem>>, %arg8: memref<4x1xf32, #tpu.memory_space<vmem>>, %arg9: memref<1x4x256xf32, #tpu.memory_space<vmem>>) attributes {dimension_semantics = [#tpu.dimension_semantics<parallel>, #tpu.dimension_semantics<parallel>], iteration_bounds = array<i64: 2, 1>, scalar_prefetch = 0 : i64, scratch_operands = 0 : i64, tpu.core_type = #tpu.core_type<tc>, window_params = [{transform_indices = @transform_0, window_bounds = array<i64: 1, 8, 256>}, {transform_indices = @transform_1, window_bounds = array<i64: 1, 8, 256>}, {transform_indices = @transform_2, window_bounds = array<i64: 1, 2, 256>}, {transform_indices = @transform_3, window_bounds = array<i64: 1, 1, 256>}, {pipeline_mode = #tpu.pipeline_mode<synchronous>, transform_indices = @transform_4, window_bounds = array<i64: 4, 8>}, {pipeline_mode = #tpu.pipeline_mode<synchronous>, transform_indices = @transform_5, window_bounds = array<i64: 4, 8>}, {pipeline_mode = #tpu.pipeline_mode<synchronous>, transform_indices = @transform_6, window_bounds = array<i64: 4, 1>}, {transform_indices = @transform_7, window_bounds = array<i64: 1, 4, 256>}]} {
    %c0 = arith.constant 0 : index
    %c0_0 = arith.constant 0 : index
    %c0_1 = arith.constant 0 : index
    %0 = vector.load %arg2[%c0, %c0_0, %c0_1] : memref<1x8x256xbf16, #tpu.memory_space<vmem>>, vector<1x8x256xbf16>
    %1 = vector.shape_cast %0 : vector<1x8x256xbf16> to vector<8x256xbf16>
    %c0_2 = arith.constant 0 : index
    %c0_3 = arith.constant 0 : index
    %c0_4 = arith.constant 0 : index
    %2 = vector.load %arg3[%c0_2, %c0_3, %c0_4] : memref<1x8x256xbf16, #tpu.memory_space<vmem>>, vector<1x8x256xbf16>
    %3 = vector.shape_cast %2 : vector<1x8x256xbf16> to vector<8x256xbf16>
    %c0_5 = arith.constant 0 : index
    %c0_6 = arith.constant 0 : index
    %c0_7 = arith.constant 0 : index
    %4 = vector.load %arg4[%c0_5, %c0_6, %c0_7] : memref<1x2x256xbf16, #tpu.memory_space<vmem>>, vector<1x2x256xbf16>
    %5 = vector.shape_cast %4 : vector<1x2x256xbf16> to vector<2x256xbf16>
    %c0_8 = arith.constant 0 : index
    %c0_9 = arith.constant 0 : index
    %c0_10 = arith.constant 0 : index
    %6 = vector.load %arg5[%c0_8, %c0_9, %c0_10] : memref<1x1x256xf32, #tpu.memory_space<vmem>>, vector<1x1x256xf32>
    %7 = vector.shape_cast %6 : vector<1x1x256xf32> to vector<1x256xf32>
    %8 = arith.extf %3 : vector<8x256xbf16> to vector<8x256xf32>
    %cst = arith.constant dense<0.000000e+00> : vector<256x256xf32>
    %9 = tpu.matmul %5, %5, %cst {dimension_numbers = #tpu.dot_dimension_numbers<[0], [0], [1], [1], [0, 1, 1, 1], [], []>} : vector<2x256xbf16>, vector<2x256xbf16>, vector<256x256xf32> -> vector<256x256xf32>
    %cst_11 = arith.constant dense<0xFF800000> : vector<256xf32>
    %10 = vector.multi_reduction <maximumf>, %9, %cst_11 [1] : vector<256x256xf32> to vector<256xf32>
    %11 = vector.shape_cast %10 : vector<256xf32> to vector<256x1xf32>
    %12 = vector.broadcast %11 : vector<256x1xf32> to vector<256x256xf32>
    %13 = arith.subf %9, %12 : vector<256x256xf32>
    %14 = math.exp %13 : vector<256x256xf32>
    %15 = arith.truncf %14 : vector<256x256xf32> to vector<256x256xbf16>
    %cst_12 = arith.constant 1.000000e+00 : bf16
    %16 = vector.broadcast %cst_12 : bf16 to vector<1x256xbf16>
    %cst_13 = arith.constant dense<0.000000e+00> : vector<1x256xf32>
    %17 = tpu.matmul %16, %15, %cst_13 {dimension_numbers = #tpu.dot_dimension_numbers<[1], [1], [0], [0], [0, 0, 1, 0], [], []>} : vector<1x256xbf16>, vector<256x256xbf16>, vector<1x256xf32> -> vector<1x256xf32>
    %18 = tpu.reciprocal %17 {approx = true} : vector<1x256xf32> -> vector<1x256xf32>
    %cst_14 = arith.constant dense<0.000000e+00> : vector<8x256xf32>
    %19 = tpu.matmul %1, %15, %cst_14 {dimension_numbers = #tpu.dot_dimension_numbers<[1], [1], [0], [0], [0, 0, 1, 0], [], []>} : vector<8x256xbf16>, vector<256x256xbf16>, vector<8x256xf32> -> vector<8x256xf32>
    %20 = vector.broadcast %18 : vector<1x256xf32> to vector<8x256xf32>
    %21 = arith.mulf %19, %20 : vector<8x256xf32>
    %cst_15 = arith.constant dense<0.000000e+00> : vector<8x256xf32>
    %22 = tpu.matmul %3, %15, %cst_15 {dimension_numbers = #tpu.dot_dimension_numbers<[1], [1], [0], [0], [0, 0, 1, 0], [], []>} : vector<8x256xbf16>, vector<256x256xbf16>, vector<8x256xf32> -> vector<8x256xf32>
    %23 = vector.broadcast %18 : vector<1x256xf32> to vector<8x256xf32>
    %24 = arith.mulf %22, %23 : vector<8x256xf32>
    %cst_16 = arith.constant 1.000000e+00 : f32
    %25 = vector.broadcast %cst_16 : f32 to vector<1x256xf32>
    %26 = arith.subf %25, %7 : vector<1x256xf32>
    %27 = vector.broadcast %26 : vector<1x256xf32> to vector<8x256xf32>
    %28 = arith.mulf %27, %24 : vector<8x256xf32>
    %29 = vector.broadcast %7 : vector<1x256xf32> to vector<8x256xf32>
    %30 = arith.mulf %29, %8 : vector<8x256xf32>
    %31 = arith.addf %28, %30 : vector<8x256xf32>
    %c0_17 = arith.constant 0 : index
    %c0_18 = arith.constant 0 : index
    %32 = vector.load %arg6[%c0_17, %c0_18] : memref<4x8xf32, #tpu.memory_space<vmem>>, vector<4x8xf32>
    %cst_19 = arith.constant dense<0.000000e+00> : vector<4x256xf32>
    %33 = tpu.matmul %32, %31, %cst_19 {dimension_numbers = #tpu.dot_dimension_numbers<[1], [0], [0], [1], [0, 0, 1, 1], [], []>} : vector<4x8xf32>, vector<8x256xf32>, vector<4x256xf32> -> vector<4x256xf32>
    %c0_20 = arith.constant 0 : index
    %c0_21 = arith.constant 0 : index
    %34 = vector.load %arg7[%c0_20, %c0_21] : memref<4x8xf32, #tpu.memory_space<vmem>>, vector<4x8xf32>
    %cst_22 = arith.constant dense<0.000000e+00> : vector<4x256xf32>
    %35 = tpu.matmul %34, %21, %cst_22 {dimension_numbers = #tpu.dot_dimension_numbers<[1], [0], [0], [1], [0, 0, 1, 1], [], []>} : vector<4x8xf32>, vector<8x256xf32>, vector<4x256xf32> -> vector<4x256xf32>
    %36 = arith.addf %33, %35 : vector<4x256xf32>
    %c0_23 = arith.constant 0 : index
    %c0_24 = arith.constant 0 : index
    %37 = vector.load %arg8[%c0_23, %c0_24] : memref<4x1xf32, #tpu.memory_space<vmem>>, vector<4x1xf32>
    %38 = vector.broadcast %37 : vector<4x1xf32> to vector<4x256xf32>
    %39 = arith.addf %36, %38 : vector<4x256xf32>
    %c0_25 = arith.constant 0 : index
    %c0_26 = arith.constant 0 : index
    %c0_27 = arith.constant 0 : index
    %40 = vector.load %arg9[%c0_25, %c0_26, %c0_27] : memref<1x4x256xf32, #tpu.memory_space<vmem>>, vector<1x4x256xf32>
    %41 = vector.shape_cast %40 : vector<1x4x256xf32> to vector<4x256xf32>
    %42 = vector.shape_cast %39 : vector<4x256xf32> to vector<1x4x256xf32>
    tpu.vector_store %arg9[%c0_25, %c0_26, %c0_27], %42 {strides = array<i32>} : memref<1x4x256xf32, #tpu.memory_space<vmem>>, vector<1x4x256xf32>,
    return
  }
  func.func @transform_0(%arg0: i32, %arg1: i32) -> (i32, i32, i32) {
    %c0_i32 = arith.constant 0 : i32
    %c0_i32_0 = arith.constant 0 : i32
    %c0_i32_1 = arith.constant 0 : i32
    return %arg0, %c0_i32, %c0_i32_0 : i32, i32, i32
  }
  func.func @transform_1(%arg0: i32, %arg1: i32) -> (i32, i32, i32) {
    %c0_i32 = arith.constant 0 : i32
    %c0_i32_0 = arith.constant 0 : i32
    %c0_i32_1 = arith.constant 0 : i32
    return %arg0, %c0_i32, %c0_i32_0 : i32, i32, i32
  }
  func.func @transform_2(%arg0: i32, %arg1: i32) -> (i32, i32, i32) {
    %c0_i32 = arith.constant 0 : i32
    %c0_i32_0 = arith.constant 0 : i32
    %c0_i32_1 = arith.constant 0 : i32
    return %arg0, %c0_i32, %c0_i32_0 : i32, i32, i32
  }
  func.func @transform_3(%arg0: i32, %arg1: i32) -> (i32, i32, i32) {
    %c0_i32 = arith.constant 0 : i32
    %c0_i32_0 = arith.constant 0 : i32
    return %arg0, %c0_i32, %arg1 : i32, i32, i32
  }
  func.func @transform_4(%arg0: i32, %arg1: i32) -> (i32, i32) {
    %c0_i32 = arith.constant 0 : i32
    %c0_i32_0 = arith.constant 0 : i32
    %c0_i32_1 = arith.constant 0 : i32
    return %c0_i32, %c0_i32_0 : i32, i32
  }
  func.func @transform_5(%arg0: i32, %arg1: i32) -> (i32, i32) {
    %c0_i32 = arith.constant 0 : i32
    %c0_i32_0 = arith.constant 0 : i32
    %c0_i32_1 = arith.constant 0 : i32
    return %c0_i32, %c0_i32_0 : i32, i32
  }
  func.func @transform_6(%arg0: i32, %arg1: i32) -> (i32, i32) {
    %c0_i32 = arith.constant 0 : i32
    %c0_i32_0 = arith.constant 0 : i32
    %c0_i32_1 = arith.constant 0 : i32
    return %c0_i32, %c0_i32_0 : i32, i32
  }
  func.func @transform_7(%arg0: i32, %arg1: i32) -> (i32, i32, i32) {
    %c0_i32 = arith.constant 0 : i32
    %c0_i32_0 = arith.constant 0 : i32
    return %arg0, %c0_i32, %arg1 : i32, i32, i32
  }
}

</mosaic_0001>

<bundles_post_ra>
// kernel: example_guided_attention.1
= control target key start
LH: loop header
LB: loop body
LE: loop exit
PB: predicated region body
PF: predicated region fallthrough
CT: control target
= control target key end

     0   :  { %s1747_s24 = smov 0   ;;  %s1749_s25 = smov 0   ;;  %s2263_s0 = inlined_call_operand.vmem [shape: bf16[2,8,256], index: 0, kind: input, shape index: {}]   ;;  %s2264_s1 = inlined_call_operand.vmem [shape: bf16[2,8,256], index: 1, kind: input, shape index: {}]   ;;  %s2265_s2 = inlined_call_operand.vmem [shape: bf16[2,2,256], index: 2, kind: input, shape index: {}]   ;;  %s2266_s3 = inlined_call_operand.vmem [shape: f32[2,1,256], index: 3, kind: input, shape index: {}]   ;;  %s2267_s4 = inlined_call_operand.vmem [shape: f32[4,8], index: 4, kind: input, shape index: {}]   ;;  %s2268_s5 = inlined_call_operand.vmem [shape: f32[4,8], index: 5, kind: input, shape index: {}]   ;;  %s2269_s6 = inlined_call_operand.vmem [shape: f32[4,1], index: 6, kind: input, shape index: {}]   ;;  %s2270_s7 = inlined_call_operand.vmem [shape: f32[2,4,256], index: 7, kind: output, shape index: {}]  }
   0x1   :  { %s1751_s26 = smov 0  }
   0x2 LB: > { %s29_s27 = sadd.s32 1, %s1697_s25  ;;  %p1474_p0 = scmp.ge.s32.totalorder %s1701_s26, 1  ;;  %s1701_s26 = sphi %s1751_s26, %s17_s26   ;;  %s1697_s25 = sphi %s1749_s25, %s2315_s25   ;;  %s1693_s24 = sphi %s1747_s24, %s2314_s24  }
   0x3   : > { %p31_p1 = scmp.ge.s32.totalorder %s29_s27, 2  ;;  %p286_p2 = scmp.lt.s32.totalorder %s1701_s26, 3 }
   0x5   : > { %s2317_s27 = smov (%p31_p1, %s29_s27), 0  ;;  %p287_p3 = pnand %p1474_p0, %p286_p2 }
   0x7   : > { %290 = sbr.rel (%p287_p3) target bundleno = 1200 (0x4b0), region = 48 }
   0xe   : > { %p339_p4 = scmp.lt.s32.totalorder %s1693_s24, 1  ;;  %v392_v0 = vlaneseq  ;;  %v1703_v1 = vmov 1966171168   ;;  %v1704_v3 = vmov 0   ;;  %vm486_vm0 = vcmask 1040384  }
   0xf   : > { %v390_v2 = vunpack.c.l.s4 %v1703_v1  ;;  %525 = vmatprep.mubr.bf16.mxu0 %v1704_v3  ;;  %vm437_vm1 = vcmask 15360   ;;  %vm1188_vm2 = vcmask 64512  }
  0x10   : > { %s2319_s24 = smov (!%p339_p4, %s1693_s24), 1  ;;  %v1768_v4 = vshrl.u32 %v392_v0, 7 }
  0x11   : > { %v391_v5 = vunpack.c.0.s8 %v390_v2  ;;  %s1479_s28 = sshll.u32 %s2319_s24, 1  ;;  %s2033_s9 = sshll.u32 %s2319_s24, 3 }
  0x12   : > { %2286 = vst [vmem:[#allocation2_spill] sm:$0xff] %v1768_v4  ;;  %s352_s8 = scalar_lea.vmem %s2265_s2, %s1479_s28  ;;  %s343_s12 = scalar_lea.vmem %s2263_s0, %s2033_s9 }
  0x13   : > { %v394_v6 = vsub.s32 %v391_v5, %v1768_v4  ;;  %v1483_v7 = vld.sshfl [vmem:[%s352_s8] sm:$0x11 pattern:$0x75316420]  ;;  %s348_s15 = scalar_lea.vmem %s2264_s1, %s2033_s9  ;;  %s360_s22 = scalar_lea.vmem %s2266_s3, %s1479_s28 }
  0x14   : > { %v388_v9 = vcombine.high %v1483_v7, %v1483_v7  ;;  %s370_s30 = scalar_lea.vmem %s2270_s7, %s2033_s9 }
  0x15   : > { %v395_v8 = vrot.slane %v1483_v7, %v394_v6 }
  0x16   : > { %v402_v10 = vrot.slane %v388_v9, %v394_v6 }
  0x17   : > { %405 = vxpose.xlu0.c.b16.start.end [1/1] (short) %v395_v8, 128  ;;  %v488_v11 = vsel %vm486_vm0, %v395_v8, 0 }
  0x18   : > { %1484 = vmatprep.subr.msk.bf16.mxu0 %vm486_vm0, %v402_v10 }
  0x19   : > { %494 = vmatpush1.bf16.msra.mxu0 %v488_v11 }
  0x34   : > { %421 = vxpose.xlu0.c.b16.start.end [1/1] (short) %v402_v10, 128 }
  0x3d   : > { %1542 = vset.pattern.permute.xlu0 %v1704_v3 }
  0x7d   : > { %v413_v12 = vpop.trf.xlu0 }
  0x7e   : > { %1485 = vmatmul.mubr.msk.bf16.vlgmr.msra.gmra.mrb[0].mxu0 %vm437_vm1, %v413_v12 }
  0x7f   : > { %535 = vmatprep.mubr.bf16.mxu0 %v1704_v3 }
  0x81   : > { %v414_v13 = vpop.trf.xlu0 }
  0x85   : > { %v415_v14 = vpop.trf.xlu0 }
  0x86   : > { %1486 = vmatmul.mubr.msk.bf16.gmra.mrb[4].mxu0 %vm437_vm1, %v414_v13 }
  0x87   : > { %545 = vmatprep.mubr.bf16.mxu0 %v1704_v3 }
  0x89   : > { %v416_v15 = vpop.trf.xlu0 }
  0x8d   : > { %v417_v16 = vpop.trf.xlu0 }
  0x8e   : > { %1487 = vmatmul.mubr.msk.bf16.gmra.mrb[8].mxu0 %vm437_vm1, %v415_v14 }
  0x8f   : > { %555 = vmatprep.mubr.bf16.mxu0 %v1704_v3 }
  0x91   : > { %v418_v17 = vpop.trf.xlu0 }
  0x95   : > { %v419_v18 = vpop.trf.xlu0 }
  0x96   : > { %1488 = vmatmul.mubr.msk.bf16.gmra.mrb[12].mxu0 %vm437_vm1, %v416_v15 }
  0x97   : > { %565 = vmatprep.mubr.bf16.mxu0 %v1704_v3 }
  0x99   : > { %v420_v19 = vpop.trf.xlu0 }
  0x9d   : > { %v429_v20 = vpop.trf.xlu0 }
  0x9e   : > { %1489 = vmatmul.mubr.msk.bf16.gmra.mrb[16].mxu0 %vm437_vm1, %v417_v16 }
  0x9f   : > { %575 = vmatprep.mubr.bf16.mxu0 %v1704_v3 }
  0xa1   : > { %v430_v21 = vpop.trf.xlu0 }
  0xa5   : > { %v431_v22 = vpop.trf.xlu0 }
  0xa6   : > { %1490 = vmatmul.mubr.msk.bf16.gmra.mrb[20].mxu0 %vm437_vm1, %v418_v17 }
  0xa7   : > { %585 = vmatprep.mubr.bf16.mxu0 %v1704_v3 }
  0xa9   : > { %v432_v23 = vpop.trf.xlu0 }
  0xad   : > { %v433_v24 = vpop.trf.xlu0 }
  0xae   : > { %1491 = vmatmul.mubr.msk.bf16.gmra.mrb[24].mxu0 %vm437_vm1, %v419_v18 }
  0xaf   : > { %595 = vmatprep.mubr.bf16.mxu0 %v1704_v3 }
  0xb1   : > { %v434_v25 = vpop.trf.xlu0 }
  0xb5   : > { %v435_v26 = vpop.trf.xlu0 }
  0xb6   : > { %1492 = vmatmul.mubr.msk.bf16.gmra.mrb[28].mxu0 %vm437_vm1, %v420_v19 }
  0xb7   : > { %605 = vmatprep.mubr.bf16.mxu0 %v1704_v3 }
  0xb9   : > { %v436_v27 = vpop.trf.xlu0 }
  0xbe   : > { %1493 = vmatmul.mubr.msk.bf16.gmra.mrb[32].mxu0 %vm437_vm1, %v429_v20 }
  0xbf   : > { %615 = vmatprep.mubr.bf16.mxu0 %v1704_v3 }
  0xc6   : > { %1494 = vmatmul.mubr.msk.bf16.gmra.mrb[36].mxu0 %vm437_vm1, %v430_v21 }
  0xc7   : > { %625 = vmatprep.mubr.bf16.mxu0 %v1704_v3 }
  0xce   : > { %1495 = vmatmul.mubr.msk.bf16.gmra.mrb[40].mxu0 %vm437_vm1, %v431_v22 }
  0xcf   : > { %635 = vmatprep.mubr.bf16.mxu0 %v1704_v3 }
  0xd6   : > { %1496 = vmatmul.mubr.msk.bf16.gmra.mrb[44].mxu0 %vm437_vm1, %v432_v23 }
  0xd7   : > { %645 = vmatprep.mubr.bf16.mxu0 %v1704_v3 }
  0xde   : > { %1497 = vmatmul.mubr.msk.bf16.gmra.mrb[48].mxu0 %vm437_vm1, %v433_v24 }
  0xdf   : > { %655 = vmatprep.mubr.bf16.mxu0 %v1704_v3 }
  0xe6   : > { %1498 = vmatmul.mubr.msk.bf16.gmra.mrb[52].mxu0 %vm437_vm1, %v434_v25 }
  0xe7   : > { %665 = vmatprep.mubr.bf16.mxu0 %v1704_v3 }
  0xee   : > { %1499 = vmatmul.mubr.msk.bf16.gmra.mrb[56].mxu0 %vm437_vm1, %v435_v26 }
  0xef   : > { %675 = vmatprep.mubr.bf16.mxu0 %v1704_v3 }
  0xf6   : > { %1500 = vmatmul.mubr.msk.bf16.gmra.mrb[60].mxu0 %vm437_vm1, %v436_v27 }
 0x151   : > { %v1809_v28 = vpop.f32.mrb[0].mxu0 }
 0x152   : > { %v1811_v29 = vpop.f32.mrb[1].mxu0 }
 0x153   : > { %v1813_v30 = vpop.f32.mrb[2].mxu0  ;;  %v686_v31 = vmax.f32 %v1809_v28, %v1811_v29 }
 0x154   : > { %v1817_v32 = vpop.f32.mrb[3].mxu0 }
 0x155   : > { %687 = vmax.xlane.f32.xlu1 %v686_v31  ;;  %v689_v33 = vmax.f32 %v1813_v30, %v1817_v32 }
 0x159   : > { %690 = vmax.xlane.f32.xlu1 %v689_v33  ;;  %v1821_v34 = vpop.f32.mrb[4].mxu0 }
 0x15a   : > { %v1823_v35 = vpop.f32.mrb[5].mxu0 }
 0x15b   : > { %v1825_v36 = vpop.f32.mrb[6].mxu0  ;;  %v692_v37 = vmax.f32 %v1821_v34, %v1823_v35 }
 0x15c   : > { %v1829_v38 = vpop.f32.mrb[7].mxu0 }
 0x15d   : > { %693 = vmax.xlane.f32.xlu1 %v692_v37  ;;  %v695_v39 = vmax.f32 %v1825_v36, %v1829_v38 }
 0x161   : > { %696 = vmax.xlane.f32.xlu1 %v695_v39  ;;  %v1833_v40 = vpop.f32.mrb[8].mxu0 }
 0x162   : > { %v1835_v41 = vpop.f32.mrb[9].mxu0 }
 0x163   : > { %v1837_v42 = vpop.f32.mrb[10].mxu0  ;;  %v698_v43 = vmax.f32 %v1833_v40, %v1835_v41 }
 0x164   : > { %v1841_v44 = vpop.f32.mrb[11].mxu0 }
 0x165   : > { %699 = vmax.xlane.f32.xlu1 %v698_v43  ;;  %v701_v45 = vmax.f32 %v1837_v42, %v1841_v44 }
 0x169   : > { %702 = vmax.xlane.f32.xlu1 %v701_v45  ;;  %v1845_v46 = vpop.f32.mrb[12].mxu0 }
 0x16a   : > { %v1847_v47 = vpop.f32.mrb[13].mxu0 }
 0x16b   : > { %v1849_v48 = vpop.f32.mrb[14].mxu0  ;;  %v704_v49 = vmax.f32 %v1845_v46, %v1847_v47 }
 0x16c   : > { %v1853_v50 = vpop.f32.mrb[15].mxu0 }
 0x16d   : > { %705 = vmax.xlane.f32.xlu1 %v704_v49  ;;  %v707_v51 = vmax.f32 %v1849_v48, %v1853_v50 }
 0x171   : > { %708 = vmax.xlane.f32.xlu1 %v707_v51  ;;  %v1857_v52 = vpop.f32.mrb[16].mxu0 }
 0x172   : > { %v1859_v53 = vpop.f32.mrb[17].mxu0 }
 0x173   : > { %v1861_v54 = vpop.f32.mrb[18].mxu0  ;;  %v710_v55 = vmax.f32 %v1857_v52, %v1859_v53 }
 0x174   : > { %v1865_v56 = vpop.f32.mrb[19].mxu0 }
 0x175   : > { %711 = vmax.xlane.f32.xlu1 %v710_v55  ;;  %v713_v57 = vmax.f32 %v1861_v54, %v1865_v56 }
 0x177   : > { %714 = vmax.xlane.f32.xlu0 %v713_v57 }
 0x179   : > { %v1869_v58 = vpop.f32.mrb[20].mxu0 }
 0x17a   : > { %v1871_v59 = vpop.f32.mrb[21].mxu0 }
 0x17b   : > { %v1873_v60 = vpop.f32.mrb[22].mxu0  ;;  %v716_v61 = vmax.f32 %v1869_v58, %v1871_v59 }
 0x17c   : > { %v1877_v62 = vpop.f32.mrb[23].mxu0 }
 0x17d   : > { %717 = vmax.xlane.f32.xlu1 %v716_v61  ;;  %v719_v63 = vmax.f32 %v1873_v60, %v1877_v62 }
 0x181   : > { %720 = vmax.xlane.f32.xlu1 %v719_v63  ;;  %v1881_v0 = vpop.f32.mrb[24].mxu0 }
 0x182   : > { %v1883_v1 = vpop.f32.mrb[25].mxu0 }
 0x183   : > { %v1885_v2 = vpop.f32.mrb[26].mxu0  ;;  %v722_v3 = vmax.f32 %v1881_v0, %v1883_v1 }
 0x184   : > { %v1889_v5 = vpop.f32.mrb[27].mxu0 }
 0x185   : > { %723 = vmax.xlane.f32.xlu1 %v722_v3  ;;  %v725_v6 = vmax.f32 %v1885_v2, %v1889_v5 }
 0x189   : > { %726 = vmax.xlane.f32.xlu1 %v725_v6  ;;  %v1893_v7 = vpop.f32.mrb[28].mxu0 }
 0x18a   : > { %v1895_v8 = vpop.f32.mrb[29].mxu0 }
 0x18b   : > { %v1897_v9 = vpop.f32.mrb[30].mxu0  ;;  %v728_v10 = vmax.f32 %v1893_v7, %v1895_v8 }
 0x18c   : > { %v1901_v11 = vpop.f32.mrb[31].mxu0 }
 0x18d   : > { %729 = vmax.xlane.f32.xlu1 %v728_v10  ;;  %v731_v12 = vmax.f32 %v1897_v9, %v1901_v11 }
 0x191   : > { %732 = vmax.xlane.f32.xlu1 %v731_v12  ;;  %v1905_v13 = vpop.f32.mrb[32].mxu0 }
 0x192   : > { %v1907_v14 = vpop.f32.mrb[33].mxu0 }
 0x193   : > { %v1909_v15 = vpop.f32.mrb[34].mxu0  ;;  %v734_v16 = vmax.f32 %v1905_v13, %v1907_v14 }
 0x194   : > { %v1913_v17 = vpop.f32.mrb[35].mxu0 }
 0x195   : > { %735 = vmax.xlane.f32.xlu1 %v734_v16  ;;  %v737_v18 = vmax.f32 %v1909_v15, %v1913_v17 }
 0x199   : > { %738 = vmax.xlane.f32.xlu1 %v737_v18  ;;  %v1917_v19 = vpop.f32.mrb[36].mxu0 }
 0x19a   : > { %v1919_v20 = vpop.f32.mrb[37].mxu0 }
 0x19b   : > { %v1921_v21 = vpop.f32.mrb[38].mxu0  ;;  %v740_v22 = vmax.f32 %v1917_v19, %v1919_v20 }
 0x19c   : > { %v1925_v23 = vpop.f32.mrb[39].mxu0 }
 0x19d   : > { %741 = vmax.xlane.f32.xlu1 %v740_v22  ;;  %v743_v24 = vmax.f32 %v1921_v21, %v1925_v23 }
 0x1a1   : > { %744 = vmax.xlane.f32.xlu1 %v743_v24  ;;  %v1929_v25 = vpop.f32.mrb[40].mxu0 }
 0x1a2   : > { %v1931_v26 = vpop.f32.mrb[41].mxu0 }
 0x1a3   : > { %v1933_v27 = vpop.f32.mrb[42].mxu0  ;;  %v746_v31 = vmax.f32 %v1929_v25, %v1931_v26 }
 0x1a4   : > { %v1937_v33 = vpop.f32.mrb[43].mxu0 }
 0x1a5   : > { %747 = vmax.xlane.f32.xlu0 %v746_v31  ;;  %v749_v37 = vmax.f32 %v1933_v27, %v1937_v33 }
 0x1a7   : > { %750 = vmax.xlane.f32.xlu1 %v749_v37 }
 0x1a9   : > { %v1941_v39 = vpop.f32.mrb[44].mxu0 }
 0x1aa   : > { %v1943_v43 = vpop.f32.mrb[45].mxu0 }
 0x1ab   : > { %v1945_v45 = vpop.f32.mrb[46].mxu0  ;;  %v752_v49 = vmax.f32 %v1941_v39, %v1943_v43 }
 0x1ac   : > { %v1949_v51 = vpop.f32.mrb[47].mxu0 }
 0x1ad   : > { %753 = vmax.xlane.f32.xlu0 %v752_v49  ;;  %v755_v55 = vmax.f32 %v1945_v45, %v1949_v51 }
 0x1af   : > { %756 = vmax.xlane.f32.xlu1 %v755_v55 }
 0x1b1   : > { %v1953_v57 = vpop.f32.mrb[48].mxu0 }
 0x1b2   : > { %v1955_v61 = vpop.f32.mrb[49].mxu0 }
 0x1b3   : > { %v1957_v63 = vpop.f32.mrb[50].mxu0  ;;  %v758_v3 = vmax.f32 %v1953_v57, %v1955_v61 }
 0x1b4   : > { %2287 = vst [vmem:[#allocation3_spill] sm:$0xff] %v1957_v63  ;;  %v1961_v6 = vpop.f32.mrb[51].mxu0 }
 0x1b5   : > { %2288 = vst [vmem:[#allocation4_spill] sm:$0xff] %v1961_v6  ;;  %759 = vmax.xlane.f32.xlu0 %v758_v3  ;;  %v761_v10 = vmax.f32 %v1957_v63, %v1961_v6 }
 0x1b7   : > { %762 = vmax.xlane.f32.xlu1 %v761_v10 }
 0x1b9   : > { %v1965_v12 = vpop.f32.mrb[52].mxu0 }
 0x1ba   : > { %2289 = vst [vmem:[#allocation5_spill] sm:$0xff] %v1965_v12  ;;  %v1967_v16 = vpop.f32.mrb[53].mxu0 }
 0x1bb   : > { %2290 = vst [vmem:[#allocation6_spill] sm:$0xff] %v1967_v16  ;;  %v1969_v18 = vpop.f32.mrb[54].mxu0  ;;  %v764_v22 = vmax.f32 %v1965_v12, %v1967_v16 }
 0x1bc   : > { %2291 = vst [vmem:[#allocation7_spill] sm:$0xff] %v1969_v18  ;;  %v1973_v24 = vpop.f32.mrb[55].mxu0 }
 0x1bd   : > { %2292 = vst [vmem:[#allocation8_spill] sm:$0xff] %v1973_v24  ;;  %765 = vmax.xlane.f32.xlu0 %v764_v22  ;;  %v767_v31 = vmax.f32 %v1969_v18, %v1973_v24 }
 0x1bf   : > { %768 = vmax.xlane.f32.xlu1 %v767_v31 }
 0x1c1   : > { %v1977_v37 = vpop.f32.mrb[56].mxu0 }
 0x1c2   : > { %2293 = vst [vmem:[#allocation9_spill] sm:$0xff] %v1977_v37  ;;  %v1979_v49 = vpop.f32.mrb[57].mxu0 }
 0x1c3   : > { %2294 = vst [vmem:[#allocation10_spill] sm:$0xff] %v1979_v49  ;;  %v1981_v55 = vpop.f32.mrb[58].mxu0  ;;  %v770_v3 = vmax.f32 %v1977_v37, %v1979_v49 }
 0x1c4   : > { %2295 = vst [vmem:[#allocation11_spill] sm:$0xff] %v1981_v55  ;;  %v1985_v10 = vpop.f32.mrb[59].mxu0 }
 0x1c5   : > { %2296 = vst [vmem:[#allocation12_spill] sm:$0xff] %v1985_v10  ;;  %771 = vmax.xlane.f32.xlu0 %v770_v3  ;;  %v773_v4 = vmax.f32 %v1981_v55, %v1985_v10 }
 0x1c7   : > { %774 = vmax.xlane.f32.xlu1 %v773_v4 }
 0x1c9   : > { %v1989_v22 = vpop.f32.mrb[60].mxu0 }
 0x1ca   : > { %2297 = vst [vmem:[#allocation13_spill] sm:$0xff] %v1989_v22  ;;  %v1991_v24 = vpop.f32.mrb[61].mxu0 }
 0x1cb   : > { %2298 = vst [vmem:[#allocation14_spill] sm:$0xff] %v1991_v24  ;;  %v1993_v31 = vpop.f32.mrb[62].mxu0  ;;  %v776_v18 = vmax.f32 %v1989_v22, %v1991_v24 }
 0x1cc   : > { %v1997_v16 = vpop.f32.mrb[63].mxu0 }
 0x1cd   : > { %2299 = vst [vmem:[#allocation15_spill] sm:$0xff] %v1997_v16  ;;  %777 = vmax.xlane.f32.xlu0 %v776_v18  ;;  %v779_v49 = vmax.f32 %v1993_v31, %v1997_v16 }
 0x1cf   : > { %780 = vmax.xlane.f32.xlu1 %v779_v49 }
 0x1e2   : > { %v688_v3 = vpop.xlane.xlu1 %687 }
 0x1e3   : > { %v782_v10 = vsub.f32 %v1809_v28, %v688_v3  ;;  %v783_v4 = vsub.f32 %v1811_v29, %v688_v3 }
 0x1e5   : > { %v846_v55 = vmul.f32 1.442695, %v782_v10  ;;  %v848_v37 = vmul.f32 1.442695, %v783_v4 }
 0x1e6   : > { %v691_v12 = vpop.xlane.xlu1 %690 }
 0x1e7   : > { %v784_v6 = vsub.f32 %v1813_v30, %v691_v12  ;;  %v785_v63 = vsub.f32 %v1817_v32, %v691_v12  ;;  %1547 = vpow2.f32 %v846_v55 }
 0x1e8   : > { %1549 = vpow2.f32 %v848_v37  ;;  %v1705_v37 = vmov 1065369472  }
 0x1e9   : > { %v850_v24 = vmul.f32 1.442695, %v784_v6  ;;  %v852_v22 = vmul.f32 1.442695, %v785_v63  ;;  %1038 = vmatprep.mubr.bf16.mxu1 %v1705_v37 }
 0x1ea   : > { %v694_v18 = vpop.xlane.xlu1 %693 }
 0x1eb   : > { %1551 = vpow2.f32 %v850_v24  ;;  %v786_v49 = vsub.f32 %v1821_v34, %v694_v18  ;;  %v787_v16 = vsub.f32 %v1823_v35, %v694_v18 }
 0x1ec   : > { %1553 = vpow2.f32 %v852_v22 }
 0x1ed   : > { %v854_v28 = vmul.f32 1.442695, %v786_v49  ;;  %v856_v29 = vmul.f32 1.442695, %v787_v16 }
 0x1ee   : > { %v697_v10 = vpop.xlane.xlu1 %696 }
 0x1ef   : > { %v788_v3 = vsub.f32 %v1825_v36, %v697_v10  ;;  %v789_v30 = vsub.f32 %v1829_v38, %v697_v10  ;;  %1555 = vpow2.f32 %v854_v28 }
 0x1f0   : > { %1557 = vpow2.f32 %v856_v29 }
 0x1f1   : > { %v858_v32 = vmul.f32 1.442695, %v788_v3  ;;  %v860_v12 = vmul.f32 1.442695, %v789_v30  ;;  %v1548_v6 = vpop.eup %1547 }
 0x1f2   : > { %v700_v63 = vpop.xlane.xlu1 %699  ;;  %v1550_v35 = vpop.eup %1549 }
 0x1f3   : > { %1559 = vpow2.f32 %v858_v32  ;;  %v790_v24 = vsub.f32 %v1833_v40, %v700_v63  ;;  %v791_v34 = vsub.f32 %v1835_v41, %v700_v63 }
 0x1f4   : > { %1561 = vpow2.f32 %v860_v12 }
 0x1f5   : > { %v1552_v16 = vpop.eup %1551  ;;  %v862_v36 = vmul.f32 1.442695, %v790_v24  ;;  %v864_v38 = vmul.f32 1.442695, %v791_v34 }
 0x1f6   : > { %v1554_v55 = vpop.eup %1553  ;;  %v703_v22 = vpop.xlane.xlu1 %702  ;;  %v2012_v4 = vpack.c.bf16 %v1552_v16, %v1548_v6 }
 0x1f7   : > { %v792_v18 = vsub.f32 %v1837_v42, %v703_v22  ;;  %v793_v49 = vsub.f32 %v1841_v44, %v703_v22  ;;  %v2016_v28 = vpack.c.bf16 %v1554_v55, %v1550_v35  ;;  %1563 = vpow2.f32 %v862_v36 }
 0x1f8   : > { %1565 = vpow2.f32 %v864_v38  ;;  %v2043_v38 = vld [vmem:[%s343_s12] sm:$0xff] }
 0x1f9   : > { %v866_v40 = vmul.f32 1.442695, %v792_v18  ;;  %v868_v41 = vmul.f32 1.442695, %v793_v49  ;;  %1006 = vmatprep.subr.bf16.mxu1 %v2016_v28  ;;  %1056 = vmatprep.subr.bf16.mxu0 %v2016_v28  ;;  %v1556_v10 = vpop.eup %1555  ;;  %v1502_v49 = vcombine.high %v2043_v38, %v2043_v38 }
 0x1fa   : > { %1007 = vmatpush1.bf16.xpose.msra.mxu1 %v2012_v4  ;;  %1057 = vmatpush1.bf16.xpose.msra.mxu0 %v2012_v4  ;;  %v706_v29 = vpop.xlane.xlu1 %705  ;;  %v1558_v3 = vpop.eup %1557 }
 0x1fb   : > { %1567 = vpow2.f32 %v866_v40  ;;  %v794_v42 = vsub.f32 %v1845_v46, %v706_v29  ;;  %v795_v44 = vsub.f32 %v1847_v47, %v706_v29  ;;  %1088 = vmatprep.mubr.bf16.mxu0 %v1502_v49 }
 0x1fc   : > { %1569 = vpow2.f32 %v868_v41 }
 0x1fd   : > { %v1560_v30 = vpop.eup %1559  ;;  %v870_v32 = vmul.f32 1.442695, %v794_v42  ;;  %v872_v63 = vmul.f32 1.442695, %v795_v44 }
 0x1fe   : > { %v1562_v12 = vpop.eup %1561  ;;  %v709_v6 = vpop.xlane.xlu1 %708  ;;  %v2024_v24 = vpack.c.bf16 %v1560_v30, %v1556_v10 }
 0x1ff   : > { %v796_v34 = vsub.f32 %v1849_v48, %v709_v6  ;;  %v797_v35 = vsub.f32 %v1853_v50, %v709_v6  ;;  %v2028_v16 = vpack.c.bf16 %v1562_v12, %v1558_v3  ;;  %1571 = vpow2.f32 %v870_v32 }
 0x200   : > { %1573 = vpow2.f32 %v872_v63 }
 0x201   : > { %v874_v46 = vmul.f32 1.442695, %v796_v34  ;;  %v876_v36 = vmul.f32 1.442695, %v797_v35  ;;  %1008 = vmatprep.subr.bf16.mxu1 %v2028_v16  ;;  %1058 = vmatprep.subr.bf16.mxu0 %v2028_v16  ;;  %v1564_v48 = vpop.eup %1563 }
 0x202   : > { %1009 = vmatpush1.bf16.xpose.msra.mxu1 %v2024_v24  ;;  %1059 = vmatpush1.bf16.xpose.msra.mxu0 %v2024_v24  ;;  %v712_v47 = vpop.xlane.xlu1 %711  ;;  %v1566_v22 = vpop.eup %1565 }
 0x203   : > { %1575 = vpow2.f32 %v874_v46  ;;  %v798_v50 = vsub.f32 %v1857_v52, %v712_v47  ;;  %v799_v55 = vsub.f32 %v1859_v53, %v712_v47 }
 0x204   : > { %1577 = vpow2.f32 %v876_v36  ;;  %v715_v18 = vpop.xlane.xlu0 %714 }
 0x205   : > { %v1568_v40 = vpop.eup %1567  ;;  %v878_v41 = vmul.f32 1.442695, %v798_v50  ;;  %v880_v29 = vmul.f32 1.442695, %v799_v55  ;;  %v800_v10 = vsub.f32 %v1861_v54, %v715_v18  ;;  %v801_v42 = vsub.f32 %v1865_v56, %v715_v18 }
 0x206   : > { %v1570_v44 = vpop.eup %1569  ;;  %v2049_v3 = vpack.c.bf16 %v1568_v40, %v1564_v48 }
 0x207   : > { %1579 = vpow2.f32 %v878_v41  ;;  %v882_v52 = vmul.f32 1.442695, %v800_v10  ;;  %v884_v53 = vmul.f32 1.442695, %v801_v42  ;;  %v2051_v30 = vpack.c.bf16 %v1570_v44, %v1566_v22 }
 0x208   : > { %1581 = vpow2.f32 %v880_v29 }
 0x209   : > { %1583 = vpow2.f32 %v882_v52  ;;  %1010 = vmatprep.subr.bf16.mxu1 %v2051_v30  ;;  %1060 = vmatprep.subr.bf16.mxu0 %v2051_v30  ;;  %v1572_v56 = vpop.eup %1571 }
 0x20a   : > { %1585 = vpow2.f32 %v884_v53  ;;  %1011 = vmatpush1.bf16.xpose.msra.mxu1 %v2049_v3  ;;  %1061 = vmatpush1.bf16.xpose.msra.mxu0 %v2049_v3  ;;  %v718_v54 = vpop.xlane.xlu1 %717  ;;  %v1574_v63 = vpop.eup %1573 }
 0x20b   : > { %v802_v32 = vsub.f32 %v1869_v58, %v718_v54  ;;  %v803_v12 = vsub.f32 %v1871_v59, %v718_v54 }
 0x20d   : > { %v1576_v6 = vpop.eup %1575  ;;  %v886_v34 = vmul.f32 1.442695, %v802_v32  ;;  %v888_v46 = vmul.f32 1.442695, %v803_v12 }
 0x20e   : > { %v1578_v35 = vpop.eup %1577  ;;  %v721_v36 = vpop.xlane.xlu1 %720  ;;  %v2059_v47 = vpack.c.bf16 %v1576_v6, %v1572_v56 }
 0x20f   : > { %v804_v48 = vsub.f32 %v1873_v60, %v721_v36  ;;  %v805_v50 = vsub.f32 %v1877_v62, %v721_v36  ;;  %v2063_v55 = vpack.c.bf16 %v1578_v35, %v1574_v63  ;;  %1587 = vpow2.f32 %v886_v34 }
 0x210   : > { %1589 = vpow2.f32 %v888_v46 }
 0x211   : > { %v1580_v22 = vpop.eup %1579  ;;  %v890_v18 = vmul.f32 1.442695, %v804_v48  ;;  %v892_v58 = vmul.f32 1.442695, %v805_v50  ;;  %1012 = vmatprep.subr.bf16.mxu1 %v2063_v55  ;;  %1062 = vmatprep.subr.bf16.mxu0 %v2063_v55 }
 0x212   : > { %v1582_v59 = vpop.eup %1581  ;;  %1013 = vmatpush1.bf16.xpose.msra.mxu1 %v2059_v47  ;;  %1063 = vmatpush1.bf16.xpose.msra.mxu0 %v2059_v47  ;;  %v724_v49 = vpop.xlane.xlu1 %723 }
 0x213   : > { %v1584_v60 = vpop.eup %1583  ;;  %1591 = vpow2.f32 %v890_v18  ;;  %v806_v62 = vsub.f32 %v1881_v0, %v724_v49  ;;  %v807_v40 = vsub.f32 %v1883_v1, %v724_v49 }
 0x214   : > { %v1586_v41 = vpop.eup %1585  ;;  %1593 = vpow2.f32 %v892_v58  ;;  %v2071_v29 = vpack.c.bf16 %v1584_v60, %v1580_v22 }
 0x215   : > { %v894_v10 = vmul.f32 1.442695, %v806_v62  ;;  %v2073_v42 = vpack.c.bf16 %v1586_v41, %v1582_v59  ;;  %v896_v44 = vmul.f32 1.442695, %v807_v40 }
 0x216   : > { %v727_v52 = vpop.xlane.xlu1 %726 }
 0x217   : > { %1014 = vmatprep.subr.bf16.mxu1 %v2073_v42  ;;  %1064 = vmatprep.subr.bf16.mxu0 %v2073_v42  ;;  %v808_v53 = vsub.f32 %v1885_v2, %v727_v52  ;;  %v809_v54 = vsub.f32 %v1889_v5, %v727_v52  ;;  %1595 = vpow2.f32 %v894_v10 }
 0x218   : > { %1597 = vpow2.f32 %v896_v44 }
 0x219   : > { %v898_v0 = vmul.f32 1.442695, %v808_v53  ;;  %v900_v1 = vmul.f32 1.442695, %v809_v54  ;;  %v1588_v32 = vpop.eup %1587 }
 0x21a   : > { %1015 = vmatpush1.bf16.xpose.msra.mxu1 %v2071_v29  ;;  %1065 = vmatpush1.bf16.xpose.msra.mxu0 %v2071_v29  ;;  %v730_v56 = vpop.xlane.xlu1 %729  ;;  %v1590_v6 = vpop.eup %1589 }
 0x21b   : > { %1599 = vpow2.f32 %v898_v0  ;;  %v810_v12 = vsub.f32 %v1893_v7, %v730_v56  ;;  %v811_v63 = vsub.f32 %v1895_v8, %v730_v56 }
 0x21c   : > { %1601 = vpow2.f32 %v900_v1 }
 0x21d   : > { %v1592_v2 = vpop.eup %1591  ;;  %v902_v34 = vmul.f32 1.442695, %v810_v12  ;;  %v904_v35 = vmul.f32 1.442695, %v811_v63 }
 0x21e   : > { %v1594_v5 = vpop.eup %1593  ;;  %v733_v46 = vpop.xlane.xlu1 %732  ;;  %v2083_v36 = vpack.c.bf16 %v1592_v2, %v1588_v32 }
 0x21f   : > { %v812_v48 = vsub.f32 %v1897_v9, %v733_v46  ;;  %v813_v50 = vsub.f32 %v1901_v11, %v733_v46  ;;  %v2087_v22 = vpack.c.bf16 %v1594_v5, %v1590_v6  ;;  %1603 = vpow2.f32 %v902_v34 }
 0x220   : > { %1605 = vpow2.f32 %v904_v35 }
 0x221   : > { %v906_v18 = vmul.f32 1.442695, %v812_v48  ;;  %v908_v7 = vmul.f32 1.442695, %v813_v50  ;;  %1016 = vmatprep.subr.bf16.mxu1 %v2087_v22  ;;  %1066 = vmatprep.subr.bf16.mxu0 %v2087_v22  ;;  %v1596_v58 = vpop.eup %1595 }
 0x222   : > { %1017 = vmatpush1.bf16.xpose.msra.mxu1 %v2083_v36  ;;  %1067 = vmatpush1.bf16.xpose.msra.mxu0 %v2083_v36  ;;  %v736_v8 = vpop.xlane.xlu1 %735  ;;  %v1598_v59 = vpop.eup %1597 }
 0x223   : > { %1607 = vpow2.f32 %v906_v18  ;;  %v814_v9 = vsub.f32 %v1905_v13, %v736_v8  ;;  %v815_v11 = vsub.f32 %v1907_v14, %v736_v8 }
 0x224   : > { %1609 = vpow2.f32 %v908_v7 }
 0x225   : > { %v1600_v49 = vpop.eup %1599  ;;  %v910_v60 = vmul.f32 1.442695, %v814_v9  ;;  %v912_v40 = vmul.f32 1.442695, %v815_v11 }
 0x226   : > { %v1602_v62 = vpop.eup %1601  ;;  %v739_v41 = vpop.xlane.xlu1 %738  ;;  %v2095_v10 = vpack.c.bf16 %v1600_v49, %v1596_v58 }
 0x227   : > { %v816_v44 = vsub.f32 %v1909_v15, %v739_v41  ;;  %v817_v52 = vsub.f32 %v1913_v17, %v739_v41  ;;  %v2099_v53 = vpack.c.bf16 %v1602_v62, %v1598_v59  ;;  %1611 = vpow2.f32 %v910_v60 }
 0x228   : > { %1613 = vpow2.f32 %v912_v40 }
 0x229   : > { %v914_v54 = vmul.f32 1.442695, %v816_v44  ;;  %v916_v13 = vmul.f32 1.442695, %v817_v52  ;;  %1018 = vmatprep.subr.bf16.mxu1 %v2099_v53  ;;  %1068 = vmatprep.subr.bf16.mxu0 %v2099_v53  ;;  %v1604_v0 = vpop.eup %1603 }
 0x22a   : > { %1019 = vmatpush1.bf16.xpose.msra.mxu1 %v2095_v10  ;;  %1069 = vmatpush1.bf16.xpose.msra.mxu0 %v2095_v10  ;;  %v742_v14 = vpop.xlane.xlu1 %741  ;;  %v1606_v1 = vpop.eup %1605 }
 0x22b   : > { %1615 = vpow2.f32 %v914_v54  ;;  %v818_v15 = vsub.f32 %v1917_v19, %v742_v14  ;;  %v819_v17 = vsub.f32 %v1919_v20, %v742_v14 }
 0x22c   : > { %1617 = vpow2.f32 %v916_v13 }
 0x22d   : > { %v1608_v56 = vpop.eup %1607  ;;  %v918_v32 = vmul.f32 1.442695, %v818_v15  ;;  %v920_v63 = vmul.f32 1.442695, %v819_v17 }
 0x22e   : > { %v1610_v12 = vpop.eup %1609  ;;  %v745_v6 = vpop.xlane.xlu1 %744  ;;  %v2107_v2 = vpack.c.bf16 %v1608_v56, %v1604_v0 }
 0x22f   : > { %v820_v34 = vsub.f32 %v1921_v21, %v745_v6  ;;  %v821_v5 = vsub.f32 %v1925_v23, %v745_v6  ;;  %v2111_v35 = vpack.c.bf16 %v1610_v12, %v1606_v1  ;;  %1619 = vpow2.f32 %v918_v32 }
 0x230   : > { %1621 = vpow2.f32 %v920_v63 }
 0x231   : > { %v922_v46 = vmul.f32 1.442695, %v820_v34  ;;  %v924_v19 = vmul.f32 1.442695, %v821_v5  ;;  %1020 = vmatprep.subr.bf16.mxu1 %v2111_v35  ;;  %1070 = vmatprep.subr.bf16.mxu0 %v2111_v35  ;;  %v1612_v48 = vpop.eup %1611 }
 0x232   : > { %1021 = vmatpush1.bf16.xpose.msra.mxu1 %v2107_v2  ;;  %1071 = vmatpush1.bf16.xpose.msra.mxu0 %v2107_v2  ;;  %v748_v20 = vpop.xlane.xlu0 %747  ;;  %v1614_v50 = vpop.eup %1613 }
 0x233   : > { %1623 = vpow2.f32 %v922_v46  ;;  %v822_v21 = vsub.f32 %v1929_v25, %v748_v20  ;;  %v823_v23 = vsub.f32 %v1931_v26, %v748_v20 }
 0x234   : > { %1625 = vpow2.f32 %v924_v19  ;;  %v751_v18 = vpop.xlane.xlu1 %750  ;;  %v2300_v19 = vld [vmem:[#allocation3_spill] sm:$0xff] }
 0x235   : > { %v1616_v7 = vpop.eup %1615  ;;  %v926_v8 = vmul.f32 1.442695, %v822_v21  ;;  %v824_v58 = vsub.f32 %v1933_v27, %v751_v18  ;;  %v825_v9 = vsub.f32 %v1937_v33, %v751_v18  ;;  %v928_v49 = vmul.f32 1.442695, %v823_v23 }
 0x236   : > { %v1618_v11 = vpop.eup %1617  ;;  %v2121_v59 = vpack.c.bf16 %v1616_v7, %v1612_v48  ;;  %v2301_v48 = vld [vmem:[#allocation4_spill] sm:$0xff] }
 0x237   : > { %v930_v60 = vmul.f32 1.442695, %v824_v58  ;;  %v932_v62 = vmul.f32 1.442695, %v825_v9  ;;  %v2123_v40 = vpack.c.bf16 %v1618_v11, %v1614_v50  ;;  %1627 = vpow2.f32 %v926_v8  ;;  %v2302_v58 = vld [vmem:[#allocation5_spill] sm:$0xff]  ;;  %v2303_v11 = vld [vmem:[#allocation6_spill] sm:$0xff] }
 0x239   : > { %1629 = vpow2.f32 %v930_v60  ;;  %1022 = vmatprep.subr.bf16.mxu1 %v2123_v40  ;;  %1072 = vmatprep.subr.bf16.mxu0 %v2123_v40  ;;  %v1620_v26 = vpop.eup %1619 }
 0x23a   : > { %1631 = vpow2.f32 %v932_v62  ;;  %1023 = vmatpush1.bf16.xpose.msra.mxu1 %v2121_v59  ;;  %1073 = vmatpush1.bf16.xpose.msra.mxu0 %v2121_v59  ;;  %v754_v25 = vpop.xlane.xlu0 %753  ;;  %v1622_v41 = vpop.eup %1621 }
 0x23b   : > { %1633 = vpow2.f32 %v928_v49  ;;  %v826_v27 = vsub.f32 %v1941_v39, %v754_v25  ;;  %v827_v33 = vsub.f32 %v1943_v43, %v754_v25 }
 0x23c   : > { %v757_v44 = vpop.xlane.xlu1 %756 }
 0x23d   : > { %v1624_v52 = vpop.eup %1623  ;;  %v934_v54 = vmul.f32 1.442695, %v826_v27  ;;  %v828_v13 = vsub.f32 %v1945_v45, %v757_v44  ;;  %v829_v14 = vsub.f32 %v1949_v51, %v757_v44  ;;  %v936_v17 = vmul.f32 1.442695, %v827_v33  ;;  %v2304_v33 = vld [vmem:[#allocation7_spill] sm:$0xff]  ;;  %v2305_v44 = vld [vmem:[#allocation8_spill] sm:$0xff] }
 0x23e   : > { %v1626_v0 = vpop.eup %1625  ;;  %v2133_v15 = vpack.c.bf16 %v1624_v52, %v1620_v26 }
 0x23f   : > { %v938_v1 = vmul.f32 1.442695, %v828_v13  ;;  %v940_v56 = vmul.f32 1.442695, %v829_v14  ;;  %v2135_v32 = vpack.c.bf16 %v1626_v0, %v1622_v41  ;;  %1635 = vpow2.f32 %v934_v54 }
 0x241   : > { %1637 = vpow2.f32 %v938_v1  ;;  %1024 = vmatprep.subr.bf16.mxu1 %v2135_v32  ;;  %1074 = vmatprep.subr.bf16.mxu0 %v2135_v32  ;;  %v1628_v39 = vpop.eup %1627 }
 0x242   : > { %1639 = vpow2.f32 %v940_v56  ;;  %1025 = vmatpush1.bf16.xpose.msra.mxu1 %v2133_v15  ;;  %1075 = vmatpush1.bf16.xpose.msra.mxu0 %v2133_v15  ;;  %v760_v43 = vpop.xlane.xlu0 %759 }
 0x243   : > { %v1630_v45 = vpop.eup %1629  ;;  %1641 = vpow2.f32 %v936_v17  ;;  %v830_v51 = vsub.f32 %v1953_v57, %v760_v43  ;;  %v831_v12 = vsub.f32 %v1955_v61, %v760_v43 }
 0x244   : > { %v1632_v63 = vpop.eup %1631  ;;  %v763_v6 = vpop.xlane.xlu1 %762  ;;  %v2143_v34 = vpack.c.bf16 %v1630_v45, %v1628_v39  ;;  %v2306_v39 = vld [vmem:[#allocation9_spill] sm:$0xff]  ;;  %v2307_v45 = vld [vmem:[#allocation10_spill] sm:$0xff] }
 0x245   : > { %v1634_v5 = vpop.eup %1633  ;;  %v942_v46 = vmul.f32 1.442695, %v830_v51  ;;  %v832_v20 = vsub.f32 %v2300_v19, %v763_v6  ;;  %v833_v21 = vsub.f32 %v2301_v48, %v763_v6  ;;  %v944_v50 = vmul.f32 1.442695, %v831_v12 }
 0x246   : > { %v2147_v23 = vpack.c.bf16 %v1632_v63, %v1634_v5 }
 0x247   : > { %v946_v18 = vmul.f32 1.442695, %v832_v20  ;;  %v948_v7 = vmul.f32 1.442695, %v833_v21  ;;  %1643 = vpow2.f32 %v942_v46  ;;  %v2308_v20 = vld [vmem:[#allocation11_spill] sm:$0xff]  ;;  %v2309_v21 = vld [vmem:[#allocation12_spill] sm:$0xff] }
 0x248   : > { %1026 = vmatprep.subr.bf16.mxu1 %v2147_v23  ;;  %1076 = vmatprep.subr.bf16.mxu0 %v2147_v23 }
 0x249   : > { %1645 = vpow2.f32 %v946_v18  ;;  %v1636_v57 = vpop.eup %1635 }
 0x24a   : > { %1647 = vpow2.f32 %v948_v7  ;;  %1027 = vmatpush1.bf16.xpose.msra.mxu1 %v2143_v34  ;;  %1077 = vmatpush1.bf16.xpose.msra.mxu0 %v2143_v34  ;;  %v766_v61 = vpop.xlane.xlu0 %765 }
 0x24b   : > { %v1638_v8 = vpop.eup %1637  ;;  %1649 = vpow2.f32 %v944_v50  ;;  %v834_v9 = vsub.f32 %v2302_v58, %v766_v61  ;;  %v835_v49 = vsub.f32 %v2303_v11, %v766_v61 }
 0x24c   : > { %v1640_v60 = vpop.eup %1639  ;;  %v769_v62 = vpop.xlane.xlu1 %768  ;;  %v2155_v25 = vpack.c.bf16 %v1638_v8, %v1636_v57 }
 0x24d   : > { %v1642_v26 = vpop.eup %1641  ;;  %v950_v27 = vmul.f32 1.442695, %v834_v9  ;;  %v836_v41 = vsub.f32 %v2304_v33, %v769_v62  ;;  %v837_v52 = vsub.f32 %v2305_v44, %v769_v62  ;;  %v952_v13 = vmul.f32 1.442695, %v835_v49  ;;  %v2310_v9 = vld [vmem:[#allocation13_spill] sm:$0xff]  ;;  %v2311_v49 = vld [vmem:[#allocation14_spill] sm:$0xff] }
 0x24e   : > { %v2159_v54 = vpack.c.bf16 %v1640_v60, %v1642_v26 }
 0x24f   : > { %v954_v14 = vmul.f32 1.442695, %v836_v41  ;;  %v956_v0 = vmul.f32 1.442695, %v837_v52  ;;  %1651 = vpow2.f32 %v950_v27 }
 0x250   : > { %1028 = vmatprep.subr.bf16.mxu1 %v2159_v54  ;;  %1078 = vmatprep.subr.bf16.mxu0 %v2159_v54 }
 0x251   : > { %1653 = vpow2.f32 %v954_v14  ;;  %v1644_v17 = vpop.eup %1643 }
 0x252   : > { %1655 = vpow2.f32 %v956_v0  ;;  %1029 = vmatpush1.bf16.xpose.msra.mxu1 %v2155_v25  ;;  %1079 = vmatpush1.bf16.xpose.msra.mxu0 %v2155_v25  ;;  %v772_v1 = vpop.xlane.xlu0 %771 }
 0x253   : > { %v1646_v56 = vpop.eup %1645  ;;  %1657 = vpow2.f32 %v952_v13  ;;  %v838_v43 = vsub.f32 %v2306_v39, %v772_v1  ;;  %v839_v51 = vsub.f32 %v2307_v45, %v772_v1  ;;  %v2312_v13 = vld [vmem:[#allocation15_spill] sm:$0xff] }
 0x254   : > { %v1648_v12 = vpop.eup %1647  ;;  %v775_v63 = vpop.xlane.xlu1 %774  ;;  %v2167_v6 = vpack.c.bf16 %v1646_v56, %v1644_v17 }
 0x255   : > { %v1650_v5 = vpop.eup %1649  ;;  %v958_v46 = vmul.f32 1.442695, %v838_v43  ;;  %v960_v19 = vmul.f32 1.442695, %v839_v51  ;;  %v840_v48 = vsub.f32 %v2308_v20, %v775_v63  ;;  %v841_v50 = vsub.f32 %v2309_v21, %v775_v63 }
 0x256   : > { %v2171_v18 = vpack.c.bf16 %v1648_v12, %v1650_v5  ;;  %v1501_v21 = vcombine.low %v2043_v38, %v2043_v38 }
 0x257   : > { %1659 = vpow2.f32 %v958_v46  ;;  %v962_v7 = vmul.f32 1.442695, %v840_v48  ;;  %v964_v57 = vmul.f32 1.442695, %v841_v50  ;;  %v2194_v48 = vld [vmem:[%s348_s15] sm:$0xff] }
 0x258   : > { %1661 = vpow2.f32 %v960_v19  ;;  %1030 = vmatprep.subr.bf16.mxu1 %v2171_v18  ;;  %1080 = vmatprep.subr.bf16.mxu0 %v2171_v18  ;;  %v1504_v50 = vcombine.high %v2194_v48, %v2194_v48 }
 0x259   : > { %1663 = vpow2.f32 %v962_v7  ;;  %v1652_v61 = vpop.eup %1651 }
 0x25a   : > { %1665 = vpow2.f32 %v964_v57  ;;  %1031 = vmatpush1.bf16.xpose.msra.mxu1 %v2167_v6  ;;  %1081 = vmatpush1.bf16.xpose.msra.mxu0 %v2167_v6  ;;  %v778_v8 = vpop.xlane.xlu0 %777 }
 0x25b   : > { %v1654_v58 = vpop.eup %1653  ;;  %v842_v11 = vsub.f32 %v2310_v9, %v778_v8  ;;  %v843_v60 = vsub.f32 %v2311_v49, %v778_v8 }
 0x25c   : > { %v1656_v62 = vpop.eup %1655  ;;  %v781_v26 = vpop.xlane.xlu1 %780  ;;  %v2179_v27 = vpack.c.bf16 %v1654_v58, %v1652_v61 }
 0x25d   : > { %v1658_v33 = vpop.eup %1657  ;;  %v966_v41 = vmul.f32 1.442695, %v842_v11  ;;  %v968_v44 = vmul.f32 1.442695, %v843_v60  ;;  %v844_v52 = vsub.f32 %v1993_v31, %v781_v26  ;;  %v845_v14 = vsub.f32 %v2312_v13, %v781_v26 }
 0x25e   : > { %v2183_v0 = vpack.c.bf16 %v1656_v62, %v1658_v33 }
 0x25f   : > { %1667 = vpow2.f32 %v966_v41  ;;  %v970_v17 = vmul.f32 1.442695, %v844_v52  ;;  %v972_v1 = vmul.f32 1.442695, %v845_v14  ;;  %v1186_v41 = vld [vmem:[%s2267_s4] sm:$0xf] }
 0x260   : > { %1669 = vpow2.f32 %v968_v44  ;;  %1032 = vmatprep.subr.bf16.mxu1 %v2183_v0  ;;  %1082 = vmatprep.subr.bf16.mxu0 %v2183_v0 }
 0x261   : > { %v1660_v56 = vpop.eup %1659  ;;  %1671 = vpow2.f32 %v970_v17 }
 0x262   : > { %v1662_v39 = vpop.eup %1661  ;;  %1673 = vpow2.f32 %v972_v1  ;;  %1033 = vmatpush1.bf16.xpose.msra.mxu1 %v2179_v27  ;;  %1083 = vmatpush1.bf16.xpose.msra.mxu0 %v2179_v27 }
 0x263   : > { %v1664_v31 = vpop.eup %1663 }
 0x264   : > { %v1666_v43 = vpop.eup %1665  ;;  %v1002_v45 = vpack.c.bf16 %v1664_v31, %v1660_v56 }
 0x265   : > { %v1003_v51 = vpack.c.bf16 %v1666_v43, %v1662_v39 }
 0x267   : > { %1034 = vmatprep.subr.bf16.mxu1 %v1003_v51  ;;  %1084 = vmatprep.subr.bf16.mxu0 %v1003_v51 }
 0x269   : > { %v1668_v12 = vpop.eup %1667 }
 0x26a   : > { %v1670_v63 = vpop.eup %1669  ;;  %1035 = vmatpush1.bf16.xpose.msra.mxu1 %v1002_v45  ;;  %1085 = vmatpush1.bf16.xpose.msra.mxu0 %v1002_v45 }
 0x26b   : > { %v1672_v5 = vpop.eup %1671 }
 0x26c   : > { %v1674_v46 = vpop.eup %1673  ;;  %v1004_v19 = vpack.c.bf16 %v1672_v5, %v1668_v12 }
 0x26d   : > { %v1005_v20 = vpack.c.bf16 %v1674_v46, %v1670_v63 }
 0x26f   : > { %1036 = vmatprep.subr.bf16.mxu1 %v1005_v20  ;;  %1086 = vmatprep.subr.bf16.mxu0 %v1005_v20 }
 0x272   : > { %1037 = vmatpush1.bf16.xpose.msra.mxu1 %v1004_v19  ;;  %1087 = vmatpush1.bf16.xpose.msra.mxu0 %v1004_v19 }
 0x273   : > { %1114 = vmatprep.subr.bf16.mxu1 %v2016_v28 }
 0x279   : > { %1039 = vmatmul.mubr.bf16.vlgmr.msra.gmra.mrb[0].mxu1 %v1705_v37  ;;  %1089 = vmatmul.mubr.bf16.vlgmr.msra.gmra.mrb[64].mxu0 %v1501_v21  ;;  %v1503_v37 = vcombine.low %v2194_v48, %v2194_v48 }
 0x27a   : > { %1115 = vmatpush1.bf16.xpose.msra.mxu1 %v2012_v4  ;;  %1146 = vmatprep.mubr.bf16.mxu1 %v1504_v50 }
 0x27b   : > { %1116 = vmatprep.subr.bf16.mxu1 %v2028_v16 }
 0x282   : > { %1117 = vmatpush1.bf16.xpose.msra.mxu1 %v2024_v24 }
 0x283   : > { %1118 = vmatprep.subr.bf16.mxu1 %v2051_v30  ;;  %v1706_v30 = vmov 0.0  }
 0x284   : > { %1256 = vmatprep.mubr.f32.mxu0 %v1706_v30 }
 0x28a   : > { %1119 = vmatpush1.bf16.xpose.msra.mxu1 %v2049_v3 }
 0x28b   : > { %1120 = vmatprep.subr.bf16.mxu1 %v2063_v55 }
 0x292   : > { %1121 = vmatpush1.bf16.xpose.msra.mxu1 %v2059_v47 }
 0x293   : > { %1122 = vmatprep.subr.bf16.mxu1 %v2073_v42 }
 0x29a   : > { %1123 = vmatpush1.bf16.xpose.msra.mxu1 %v2071_v29  ;;  %v2313_v29 = vld [vmem:[#allocation2_spill] sm:$0xff] }
 0x29b   : > { %1124 = vmatprep.subr.bf16.mxu1 %v2087_v22  ;;  %v1099_v42 = vsub.s32 0, %v2313_v29 }
 0x2a2   : > { %1125 = vmatpush1.bf16.xpose.msra.mxu1 %v2083_v36  ;;  %v1337_v36 = vld [vmem:[%s2269_s6] sm:$0xf] }
 0x2a3   : > { %1126 = vmatprep.subr.bf16.mxu1 %v2099_v53  ;;  %1340 = vperm.xlu0 %1542, %v1337_v36  }
 0x2aa   : > { %1127 = vmatpush1.bf16.xpose.msra.mxu1 %v2095_v10 }
 0x2ab   : > { %1128 = vmatprep.subr.bf16.mxu1 %v2111_v35 }
 0x2b2   : > { %1129 = vmatpush1.bf16.xpose.msra.mxu1 %v2107_v2 }
 0x2b3   : > { %1130 = vmatprep.subr.bf16.mxu1 %v2123_v40  ;;  %v1187_v40 = vld [vmem:[%s2268_s5] sm:$0xf] }
 0x2ba   : > { %1131 = vmatpush1.bf16.xpose.msra.mxu1 %v2121_v59 }
 0x2bb   : > { %1132 = vmatprep.subr.bf16.mxu1 %v2135_v32  ;;  %v1165_v32 = vsub.s32 1, %v2313_v29 }
 0x2c2   : > { %1133 = vmatpush1.bf16.xpose.msra.mxu1 %v2133_v15  ;;  %v377_v15 = vld [vmem:[%s360_s22] sm:$0x3] }
 0x2c3   : > { %1134 = vmatprep.subr.bf16.mxu1 %v2147_v23  ;;  %v1175_v23 = vrot.slane %v377_v15, %v1099_v42 }
 0x2ca   : > { %1135 = vmatpush1.bf16.xpose.msra.mxu1 %v2143_v34  ;;  %v1157_v34 = vsub.f32 1.0, %v377_v15 }
 0x2cb   : > { %1136 = vmatprep.subr.bf16.mxu1 %v2159_v54  ;;  %v379_v54 = vunpack.c.h.bf16 %v2194_v48 }
 0x2cc   : > { %v1166_v57 = vrot.slane %v1157_v34, %v1165_v32 }
 0x2d2   : > { %1137 = vmatpush1.bf16.xpose.msra.mxu1 %v2155_v25  ;;  %v378_v25 = vunpack.c.l.bf16 %v2194_v48 }
 0x2d3   : > { %1138 = vmatprep.subr.bf16.mxu1 %v2171_v18  ;;  %v1162_v18 = vrot.slane %v1157_v34, %v1099_v42 }
 0x2d4   : > { %v1182_v8 = vmul.f32 %v1175_v23, %v378_v25 }
 0x2da   : > { %1139 = vmatpush1.bf16.xpose.msra.mxu1 %v2167_v6  ;;  %v1179_v6 = vrot.slane %v377_v15, %v1165_v32 }
 0x2db   : > { %1140 = vmatprep.subr.bf16.mxu1 %v2183_v0 }
 0x2dc   : > { %v1183_v49 = vmul.f32 %v1179_v6, %v379_v54 }
 0x2e2   : > { %1141 = vmatpush1.bf16.xpose.msra.mxu1 %v2179_v27 }
 0x2e3   : > { %1142 = vmatprep.subr.bf16.mxu1 %v1003_v51 }
 0x2ea   : > { %1143 = vmatpush1.bf16.xpose.msra.mxu1 %v1002_v45 }
 0x2eb   : > { %1144 = vmatprep.subr.bf16.mxu1 %v1005_v20 }
 0x2f2   : > { %1145 = vmatpush1.bf16.xpose.msra.mxu1 %v1004_v19 }
 0x2f9   : > { %1147 = vmatmul.mubr.bf16.vlgmr.msra.gmra.mrb[4].mxu1 %v1503_v37 }
 0x322   : > { %v1341_v44 = vpop.permute.xlu0 %1340 }
 0x34c   : > { %v1040_v4 = vpop.f32.mrb[0].mxu1  ;;  %v1090_v28 = vpop.f32.mrb[64].mxu0 }
 0x34d   : > { %1675 = vrcp.f32 %v1040_v4  ;;  %v1042_v24 = vpop.f32.mrb[1].mxu1  ;;  %v1092_v16 = vpop.f32.mrb[65].mxu0 }
 0x34e   : > { %1677 = vrcp.f32 %v1042_v24  ;;  %v1044_v38 = vpop.f32.mrb[2].mxu1  ;;  %v1094_v3 = vpop.f32.mrb[66].mxu0 }
 0x34f   : > { %v1045_v47 = vpop.f32.mrb[3].mxu1  ;;  %v1095_v55 = vpop.f32.mrb[67].mxu0 }
 0x357   : > { %v1676_v22 = vpop.eup %1675 }
 0x358   : > { %v1678_v10 = vpop.eup %1677  ;;  %v1100_v53 = vrot.slane %v1676_v22, %v1099_v42 }
 0x359   : > { %v1104_v2 = vrot.slane %v1678_v10, %v1099_v42 }
 0x35a   : > { %v1105_v35 = vmul.f32 %v1100_v53, %v1090_v28 }
 0x35b   : > { %v1106_v59 = vmul.f32 %v1104_v2, %v1092_v16 }
 0x35d   : > { %1192 = vmatprep.subr.mxu0 %v1106_v59 }
 0x35e   : > { %1193 = vmatpush1.msra.mxu0 %v1105_v35 }
 0x35f   : > { %1505 = vmatmul.mubr.msk.f32.vlgmr.msra.gmra.mrb[68].mxu0 %vm1188_vm2, %v1187_v40 }
 0x360   : > { %1330 = vmatprep.mubr.f32.mxu0 %v1706_v30 }
 0x3cc   : > { %v1148_v7 = vpop.f32.mrb[4].mxu1 }
 0x3cd   : > { %v1155_v61 = vmul.f32 %v1148_v7, %v1100_v53  ;;  %v1150_v58 = vpop.f32.mrb[5].mxu1 }
 0x3ce   : > { %v1156_v9 = vmul.f32 %v1150_v58, %v1104_v2  ;;  %v1152_v11 = vpop.f32.mrb[6].mxu1 }
 0x3cf   : > { %v1169_v60 = vmul.f32 %v1162_v18, %v1155_v61  ;;  %v1153_v62 = vpop.f32.mrb[7].mxu1 }
 0x3d0   : > { %v1170_v26 = vmul.f32 %v1166_v57, %v1156_v9 }
 0x3d1   : > { %v1184_v27 = vadd.f32 %v1182_v8, %v1169_v60 }
 0x3d2   : > { %v1185_v33 = vadd.f32 %v1183_v49, %v1170_v26 }
 0x3d4   : > { %1266 = vmatprep.subr.mxu0 %v1185_v33 }
 0x3d5   : > { %1267 = vmatpush1.msra.mxu0 %v1184_v27 }
 0x3d6   : > { %1506 = vmatmul.mubr.msk.f32.vlgmr.msra.gmra.mrb[68].mxu0 %vm1188_vm2, %v1186_v41 }
 0x4a9   : > { %v1332_v52 = vpop.f32.mrb[68].mxu0 }
 0x4aa   : > { %v1343_v13 = vadd.f32 %v1341_v44, %v1332_v52  ;;  %v1334_v14 = vpop.f32.mrb[69].mxu0 }
 0x4ab   : > { %v1344_v0 = vadd.f32 %v1341_v44, %v1334_v14 }
 0x4ad   : > { %v1347_v17 = vcombine.low %v1343_v13, %v1344_v0 }
 0x4af   : > { %1349 = vst [vmem:[%s370_s30] sm:$0xff] %v1347_v17 }
 0x4b0 PF: > { %s17_s26 = sadd.s32 1, %s1701_s26   ;;  %s2314_s24 = smov %s1697_s25 }
 0x4b1   : > { %p14_p5 = scmp.ge.s32.totalorder %s17_s26, 4   ;;  %s2315_s25 = smov %s2317_s27 }
 0x4b3   :  { %16 = sbr.rel (!%p14_p5) target bundleno = 2 (0x2), region = 87 }

</bundles_post_ra>
